<compile_context>
chip_gen: v6e
topology: v6e:2x2x1
jax: 0.10.0
libtpu: 0.0.40
codegen_flags: <defaults>
</compile_context>

<pallas_src>
import functools

import jax
import jax.numpy as jnp
from jax import lax
from jax.experimental import pallas as pl
from jax.experimental.pallas import tpu as pltpu


def _round_up(x, m):
    return (x + m - 1) // m * m


def _local_agg_kernel(h_ref, adj_ref, a_ref, o_ref, *, leaky_alpha):
    # h_ref: (Bt, N, Dp) f32   adj_ref: (Bt, N, N) int32   a_ref: (4, Dp) f32
    h = h_ref[...]                                    # (Bt, N, Dp) f32
    adj = adj_ref[...]                                # (Bt, N, N) int32, values 0..4
    a = a_ref[...]                                    # (4, Dp) f32
    bt, n, dp = h.shape

    # Fused logits: one broadcasted multiply builds the four a_k-scaled copies of h,
    # merged along the row axis (N = one sublane tile -> free layout no-op), then a
    # single batched MXU call: (Bt, 4N, Dp) . (Bt, N, Dp)^T -> (Bt, 4N, N), f32.
    lhs = (h[:, None, :, :] * a[None, :, None, :]).reshape(bt, 4 * n, dp)
    logits = lax.dot_general(
        lhs, h,
        dimension_numbers=(((2,), (2,)), ((0,), (0,))),
        preferred_element_type=jnp.float32,
    )                                                 # (Bt, 4N, N) f32
    logits = jnp.where(logits > 0, logits, leaky_alpha * logits)   # LeakyReLU

    # Incremental select: single running `att` tensor instead of e0..e3 all live.
    att = jnp.full((bt, n, n), -9e15, dtype=jnp.float32)
    for k in range(4):
        att = jnp.where(adj == (k + 1), logits[:, k * n:(k + 1) * n, :], att)

    # Softmax over neighbors without the explicit divide (EUP reciprocal).
    m = jnp.max(att, axis=-1, keepdims=True)
    p = jnp.exp(att - m)                              # unnormalized, f32
    inv = pl.reciprocal(jnp.sum(p, axis=-1, keepdims=True), approx=True)

    out = lax.dot_general(
        p, h,
        dimension_numbers=(((2,), (1,)), ((0,), (0,))),
        preferred_element_type=jnp.float32,
    )                                                 # (Bt, N, Dp) f32
    o_ref[...] = (out * inv).astype(o_ref.dtype)      # full-lane store (Dp = k*128)


def _vmem_capacity_bytes():
    """Generation-aware VMEM capacity (v5e/v6e: 128 MiB, v7x: 64 MiB)."""
    try:
        info = pltpu.get_tpu_info()
        cap = getattr(info, "vmem_capacity_bytes", None)
        if cap:
            return int(cap)
    except Exception:
        pass
    return 64 << 20   # conservative fallback = v7x physical


def _choose_block_b(B, N, Dp, vmem_block_budget_bytes):
    """Sessions per grid step, sized against the *padded* ((8,128)-tiled) per-block
    VMEM footprint: double-buffered in/out/adj blocks + in-kernel f32 temporaries."""
    n_sub = _round_up(N, 8)        # sublane-padded N
    n_lane = _round_up(N, 128)     # lane-padded N (adj / att / logits last dim)
    d_lane = _round_up(Dp, 128)    # lane-padded D (already 128-aligned)
    per_session = (
        2 * 2 * n_sub * d_lane * 4                 # h in + out blocks, x2 buffers, f32
        + 2 * n_sub * n_lane * 4                   # int32 adj block, x2 buffers
        + _round_up(4 * N, 8) * d_lane * 4         # lhs (4N, Dp) f32
        + _round_up(4 * N, 8) * n_lane * 4         # logits (4N, N) f32
        + 2 * n_sub * n_lane * 4                   # att + p f32
        + n_sub * d_lane * 4                       # out temp f32
    )
    bt = vmem_block_budget_bytes // max(per_session, 1)
    return int(max(1, min(B, bt, 512)))


def local_aggregator(hidden, adj, a_params, leaky_alpha, *, block_b=None):
    """hidden: (B, N, Dp) f32 (Dp = 128-padded), adj: (B, N, N) int,
    a_params: (4, Dp) f32."""
    B, N, Dp = hidden.shape

    vmem_cap = _vmem_capacity_bytes()
    vmem_limit = min(int(vmem_cap * 0.75), 96 << 20)    # headroom under physical

    if block_b is None:
        block_b = _choose_block_b(B, N, Dp, min(vmem_limit // 2, 16 << 20))
    if B >= 2:
        # v7x megacore: keep >= 2 grid steps so both TensorCores get batch work.
        block_b = min(block_b, pl.cdiv(B, 2))

    adj = adj.astype(jnp.int32)                   # int8 saved nothing at (8,8) tiles
    bp = pl.cdiv(B, block_b) * block_b
    if bp != B:                                   # pad batch to whole blocks
        hidden = jnp.pad(hidden, ((0, bp - B), (0, 0), (0, 0)))
        adj = jnp.pad(adj, ((0, bp - B), (0, 0), (0, 0)))

    cost = pl.CostEstimate(
        flops=2 * bp * (4 * N * N * Dp + N * N * Dp),
        transcendentals=bp * N * N,
        bytes_accessed=bp * (2 * N * Dp * 4 + N * N * 4) + 4 * Dp * 4,
    )

    kernel = functools.partial(_local_agg_kernel, leaky_alpha=leaky_alpha)
    out = pl.pallas_call(
        kernel,
        out_shape=jax.ShapeDtypeStruct((bp, N, Dp), hidden.dtype),
        grid=(bp // block_b,),
        in_specs=[
            pl.BlockSpec((block_b, N, Dp), lambda b: (b, 0, 0)),
            pl.BlockSpec((block_b, N, N), lambda b: (b, 0, 0)),
            pl.BlockSpec((4, Dp), lambda b: (0, 0)),
        ],
        out_specs=pl.BlockSpec((block_b, N, Dp), lambda b: (b, 0, 0)),
        compiler_params=pltpu.CompilerParams(
            dimension_semantics=("parallel",),    # megacore shards the batch grid
            vmem_limit_bytes=vmem_limit,          # generation-aware
        ),
        cost_estimate=cost,
    )(hidden, adj, a_params)
    return out[:B]


def combine_graph_forward(total_items, total_adj, params, *,
                          leaky_alpha=0.2, dropout_local=0.0):
    # Embedding gather is glue; the aggregation hot path runs in the Pallas kernel.
    # Pad the feature dim to a multiple of 128 (zero columns) so every kernel
    # load/store is full-lane and the MXU contraction dim is filled.
    emb = params["embedding"]                     # (V, D) f32
    a = params["local_agg_a"]                     # (4, D) f32
    D = emb.shape[1]
    Dp = _round_up(max(D, 128), 128)
    if Dp != D:
        emb = jnp.pad(emb, ((0, 0), (0, Dp - D)))
        a = jnp.pad(a, ((0, 0), (0, Dp - D)))

    hidden = jnp.take(emb, total_items, axis=0)   # (B, N, Dp), lane-dense
    hidden = local_aggregator(hidden, total_adj, a, leaky_alpha)
    # dropout_local = 0.0 -> F.dropout is identity; nothing to do.
    # TODO(synk): stochastic dropout (training mode, p>0) not reproduced here.
    return hidden[..., :D]                        # slice the zero padding back off


def _reference_forward(total_items, total_adj, params, leaky_alpha):
    """Pure-JAX f32 reference matching the PyTorch LocalAggregator."""
    h = jnp.take(params["embedding"], total_items, axis=0)
    a = params["local_agg_a"]
    att = jnp.full(total_adj.shape, -9e15, dtype=jnp.float32)
    for k in range(4):
        s = jnp.einsum("bid,bjd->bij", h * a[k][None, None, :], h)
        e_k = jnp.where(s > 0, s, leaky_alpha * s)
        att = jnp.where(total_adj == (k + 1), e_k, att)
    att = jax.nn.softmax(att, axis=-1)
    return jnp.einsum("bij,bjd->bid", att, h)


def init_params(key, num_node, n_category, dim):
    stdv = 1.0 / (dim ** 0.5)
    k_emb, k_a = jax.random.split(key)
    embedding = jax.random.uniform(
        k_emb, (num_node + n_category - 1, dim),
        minval=-stdv, maxval=stdv, dtype=jnp.float32)
    # a_0..a_3 of LocalAggregator, each (dim, 1) -> packed (4, dim)
    local_agg_a = jax.random.uniform(
        k_a, (4, dim), minval=-stdv, maxval=stdv, dtype=jnp.float32)
    return {"embedding": embedding, "local_agg_a": local_agg_a}


if __name__ == "__main__":
    # small, module-consistent shapes
    B, N, D = 2, 8, 32           # batch, session length, hiddenSize
    num_node, n_category = 20, 5
    leaky_alpha = 0.2            # opt.alpha
    dropout_local = 0.0          # opt.dropout_local

    key = jax.random.PRNGKey(0)
    k_params, k_items, k_adj = jax.random.split(key, 3)

    params = init_params(k_params, num_node, n_category, D)
    total_items = jax.random.randint(
        k_items, (B, N), 0, num_node + n_category - 1, dtype=jnp.int32)
    total_adj = jax.random.randint(
        k_adj, (B, N, N), 0, 5, dtype=jnp.int32)   # values in {0..4} like adj types

    out = combine_graph_forward(total_items, total_adj, params,
                                leaky_alpha=leaky_alpha,
                                dropout_local=dropout_local)
    jax.block_until_ready(out)
    assert out.shape == (B, N, D) and out.dtype == jnp.float32

    # f32 matmuls everywhere now; only the approx reciprocal deviates from the ref.
    ref = _reference_forward(total_items, total_adj, params, leaky_alpha)
    assert jnp.allclose(out, ref, atol=1e-2, rtol=1e-2)
    print("KERNEL_OK")
</pallas_src>

<mosaic_0001>
module attributes {stable_mosaic.version = 11 : i64} {
  func.func @_local_agg_kernel(%arg0: i32, %arg1: memref<1x8x128xf32, #tpu.memory_space<vmem>>, %arg2: memref<1x8x8xi32, #tpu.memory_space<vmem>>, %arg3: memref<4x128xf32, #tpu.memory_space<vmem>>, %arg4: memref<1x8x128xf32, #tpu.memory_space<vmem>>) attributes {dimension_semantics = [#tpu.dimension_semantics<parallel>], iteration_bounds = array<i64: 2>, scalar_prefetch = 0 : i64, scratch_operands = 0 : i64, tpu.core_type = #tpu.core_type<tc>, window_params = [{transform_indices = @transform_0, window_bounds = array<i64: 1, 8, 128>}, {transform_indices = @transform_1, window_bounds = array<i64: 1, 8, 8>}, {pipeline_mode = #tpu.pipeline_mode<synchronous>, transform_indices = @transform_2, window_bounds = array<i64: 4, 128>}, {transform_indices = @transform_3, window_bounds = array<i64: 1, 8, 128>}]} {
    %c0 = arith.constant 0 : index
    %c0_0 = arith.constant 0 : index
    %c0_1 = arith.constant 0 : index
    %0 = vector.load %arg1[%c0, %c0_0, %c0_1] : memref<1x8x128xf32, #tpu.memory_space<vmem>>, vector<1x8x128xf32>
    %c0_2 = arith.constant 0 : index
    %c0_3 = arith.constant 0 : index
    %c0_4 = arith.constant 0 : index
    %1 = vector.load %arg2[%c0_2, %c0_3, %c0_4] : memref<1x8x8xi32, #tpu.memory_space<vmem>>, vector<1x8x8xi32>
    %c0_5 = arith.constant 0 : index
    %c0_6 = arith.constant 0 : index
    %2 = vector.load %arg3[%c0_5, %c0_6] : memref<4x128xf32, #tpu.memory_space<vmem>>, vector<4x128xf32>
    %3 = vector.shape_cast %0 : vector<1x8x128xf32> to vector<1x1x8x128xf32>
    %4 = vector.shape_cast %2 : vector<4x128xf32> to vector<1x4x1x128xf32>
    %5 = vector.broadcast %3 : vector<1x1x8x128xf32> to vector<1x4x8x128xf32>
    %6 = vector.broadcast %4 : vector<1x4x1x128xf32> to vector<1x4x8x128xf32>
    %7 = arith.mulf %5, %6 : vector<1x4x8x128xf32>
    %8 = vector.shape_cast %7 : vector<1x4x8x128xf32> to vector<1x32x128xf32>
    %cst = arith.constant dense<0.000000e+00> : vector<1x32x8xf32>
    %9 = tpu.matmul %8, %0, %cst {dimension_numbers = #tpu.dot_dimension_numbers<[2], [2], [1], [1], [0, 0, 0, 1, 1, 1], [0], [0]>} : vector<1x32x128xf32>, vector<1x8x128xf32>, vector<1x32x8xf32> -> vector<1x32x8xf32>
    %cst_7 = arith.constant 0.000000e+00 : f32
    %10 = vector.broadcast %cst_7 : f32 to vector<1x32x8xf32>
    %11 = arith.cmpf ogt, %9, %10 : vector<1x32x8xf32>
    %cst_8 = arith.constant 2.000000e-01 : f32
    %12 = vector.broadcast %cst_8 : f32 to vector<1x32x8xf32>
    %13 = arith.mulf %12, %9 : vector<1x32x8xf32>
    %14 = arith.select %11, %9, %13 : vector<1x32x8xi1>, vector<1x32x8xf32>
    %cst_9 = arith.constant -9.000000e+15 : f32
    %15 = vector.broadcast %cst_9 : f32 to vector<1x8x8xf32>
    %c1_i32 = arith.constant 1 : i32
    %16 = vector.broadcast %c1_i32 : i32 to vector<1x8x8xi32>
    %17 = arith.cmpi eq, %1, %16 : vector<1x8x8xi32>
    %18 = vector.extract_strided_slice %14 {offsets = [0, 0, 0], sizes = [1, 8, 8], strides = [1, 1, 1]} : vector<1x32x8xf32> to vector<1x8x8xf32>
    %19 = arith.select %17, %18, %15 : vector<1x8x8xi1>, vector<1x8x8xf32>
    %c2_i32 = arith.constant 2 : i32
    %20 = vector.broadcast %c2_i32 : i32 to vector<1x8x8xi32>
    %21 = arith.cmpi eq, %1, %20 : vector<1x8x8xi32>
    %22 = vector.extract_strided_slice %14 {offsets = [0, 8, 0], sizes = [1, 8, 8], strides = [1, 1, 1]} : vector<1x32x8xf32> to vector<1x8x8xf32>
    %23 = arith.select %21, %22, %19 : vector<1x8x8xi1>, vector<1x8x8xf32>
    %c3_i32 = arith.constant 3 : i32
    %24 = vector.broadcast %c3_i32 : i32 to vector<1x8x8xi32>
    %25 = arith.cmpi eq, %1, %24 : vector<1x8x8xi32>
    %26 = vector.extract_strided_slice %14 {offsets = [0, 16, 0], sizes = [1, 8, 8], strides = [1, 1, 1]} : vector<1x32x8xf32> to vector<1x8x8xf32>
    %27 = arith.select %25, %26, %23 : vector<1x8x8xi1>, vector<1x8x8xf32>
    %c4_i32 = arith.constant 4 : i32
    %28 = vector.broadcast %c4_i32 : i32 to vector<1x8x8xi32>
    %29 = arith.cmpi eq, %1, %28 : vector<1x8x8xi32>
    %30 = vector.extract_strided_slice %14 {offsets = [0, 24, 0], sizes = [1, 8, 8], strides = [1, 1, 1]} : vector<1x32x8xf32> to vector<1x8x8xf32>
    %31 = arith.select %29, %30, %27 : vector<1x8x8xi1>, vector<1x8x8xf32>
    %cst_10 = arith.constant dense<0xFF800000> : vector<1x8xf32>
    %32 = vector.multi_reduction <maximumf>, %31, %cst_10 [2] : vector<1x8x8xf32> to vector<1x8xf32>
    %33 = vector.shape_cast %32 : vector<1x8xf32> to vector<1x8x1xf32>
    %34 = vector.broadcast %33 : vector<1x8x1xf32> to vector<1x8x8xf32>
    %35 = arith.subf %31, %34 : vector<1x8x8xf32>
    %36 = math.exp %35 : vector<1x8x8xf32>
    %cst_11 = arith.constant dense<0.000000e+00> : vector<1x8xf32>
    %37 = vector.multi_reduction <add>, %36, %cst_11 [2] : vector<1x8x8xf32> to vector<1x8xf32>
    %38 = vector.shape_cast %37 : vector<1x8xf32> to vector<1x8x1xf32>
    %39 = tpu.reciprocal %38 {approx = true} : vector<1x8x1xf32> -> vector<1x8x1xf32>
    %cst_12 = arith.constant dense<0.000000e+00> : vector<1x8x128xf32>
    %40 = tpu.matmul %36, %0, %cst_12 {dimension_numbers = #tpu.dot_dimension_numbers<[2], [1], [1], [2], [0, 0, 0, 1, 1, 2], [0], [0]>} : vector<1x8x8xf32>, vector<1x8x128xf32>, vector<1x8x128xf32> -> vector<1x8x128xf32>
    %41 = vector.broadcast %39 : vector<1x8x1xf32> to vector<1x8x128xf32>
    %42 = arith.mulf %40, %41 : vector<1x8x128xf32>
    %c0_13 = arith.constant 0 : index
    %c0_14 = arith.constant 0 : index
    %c0_15 = arith.constant 0 : index
    %43 = vector.load %arg4[%c0_13, %c0_14, %c0_15] : memref<1x8x128xf32, #tpu.memory_space<vmem>>, vector<1x8x128xf32>
    tpu.vector_store %arg4[%c0_13, %c0_14, %c0_15], %42 {strides = array<i32>} : memref<1x8x128xf32, #tpu.memory_space<vmem>>, vector<1x8x128xf32>,
    return
  }
  func.func @transform_0(%arg0: i32) -> (i32, i32, i32) {
    %c0_i32 = arith.constant 0 : i32
    %c0_i32_0 = arith.constant 0 : i32
    %c0_i32_1 = arith.constant 0 : i32
    return %arg0, %c0_i32, %c0_i32_0 : i32, i32, i32
  }
  func.func @transform_1(%arg0: i32) -> (i32, i32, i32) {
    %c0_i32 = arith.constant 0 : i32
    %c0_i32_0 = arith.constant 0 : i32
    %c0_i32_1 = arith.constant 0 : i32
    return %arg0, %c0_i32, %c0_i32_0 : i32, i32, i32
  }
  func.func @transform_2(%arg0: i32) -> (i32, i32) {
    %c0_i32 = arith.constant 0 : i32
    %c0_i32_0 = arith.constant 0 : i32
    %c0_i32_1 = arith.constant 0 : i32
    return %c0_i32, %c0_i32_0 : i32, i32
  }
  func.func @transform_3(%arg0: i32) -> (i32, i32, i32) {
    %c0_i32 = arith.constant 0 : i32
    %c0_i32_0 = arith.constant 0 : i32
    %c0_i32_1 = arith.constant 0 : i32
    return %arg0, %c0_i32, %c0_i32_0 : i32, i32, i32
  }
}

</mosaic_0001>

<bundles_post_ra>
// kernel: tpu_custom_call.1
= control target key start
LH: loop header
LB: loop body
LE: loop exit
PB: predicated region body
PF: predicated region fallthrough
CT: control target
= control target key end

     0   :  { %8 = vsyncpa [#allocation3], 0  ;;  %s1106_s0 = inlined_call_operand.hbm [shape: f32[2,8,128], index: 0, kind: input, shape index: {}]   ;;  %s1107_s1 = inlined_call_operand.hbm [shape: s32[2,8,8], index: 1, kind: input, shape index: {}]   ;;  %s1108_s2 = inlined_call_operand.hbm [shape: f32[4,128], index: 2, kind: input, shape index: {}]   ;;  %s1109_s3 = inlined_call_operand.hbm [shape: f32[2,8,128], index: 3, kind: output, shape index: {}]  }
   0x1   :  { %10 = vsyncpa [#allocation3 + $0x1], 0 }
   0x2   :  { %11 = vsyncpa [#allocation6], 0 }
   0x3   :  { %13 = vsyncpa [#allocation6 + $0x1], 0 }
   0x4   :  { %14 = vsyncpa [#allocation4], 0 }
   0x5   :  { %16 = vsyncpa [#allocation4 + $0x1], 0  ;;  %s885_s12 = smov 0   ;;  %s887_s13 = smov 0  }
   0x6   :  { %s889_s14 = smov 0   ;;  %s891_s15 = smov 0  }
   0x7 LB: > { %s906_s16 = sadd.s32 4294967295, %s856_s15   ;;  %s594_s17 = sadd.s32 4294967294, %s856_s15   ;;  %s856_s15 = sphi %s891_s15, %s1132_s15   ;;  %s852_s14 = sphi %s889_s14, %s1131_s14   ;;  %s848_s13 = sphi %s887_s13, %s1130_s13   ;;  %s844_s12 = sphi %s885_s12, %s1129_s12  }
   0x8   : > { %p42_p0 = scmp.ne.s32.totalorder %s848_s13, %s844_s12  ;;  %p1110_p1 = scmp.eq.s32.totalorder %s906_s16, 0 }
   0x9   : > { %p119_p3 = scmp.eq.s32.totalorder %s594_s17, 1  ;;  %p595_p5 = scmp.ge.s32.totalorder %s856_s15, 1 }
   0xa   : > { %p915_p4 = por %p1110_p1, %p42_p0  ;;  %p126_p7 = scmp.lt.s32.totalorder %s856_s15, 3 }
   0xb   : > { %p920_p6 = por %p119_p3, %p42_p0  ;;  %s858_s21 = smov [#allocation7]  }
   0xc   : > { %s1114_s18 = scalar_select %p915_p4, 1, 0 }
   0xd   : > { %s1115_s19 = scalar_select %p920_p6, 1, 0 }
   0xe   : > { %p925_p8 = pnand %p595_p5, %p126_p7  ;;  %s139_s22 = sshll.u32 %s858_s21, 4  ;;  %s140_s22 = int_to_ptr.vmem [resolvable:$true] %s139_s22 }
   0xf   : > { %s933_s23 = sadd.s32 1, %s856_s15   ;;  %s29_s27 = sadd.s32 1, %s852_s14 }
  0x10   : > { %s1116_s20 = scalar_select %p925_p8, 1, 0 }
  0x11   : > { %p643_p10 = pneg %p925_p8  ;;  %s26_s25 = ssub.s32 %s856_s15, %s933_s23 }
  0x12   : > { %p943_p12 = scmp.eq.s32.totalorder %s26_s25, 0  ;;  %p36_p13 = scmp.ne.s32.totalorder %s852_s14, %s848_s13 }
  0x13   : > { %p937_p11 = pnand %p643_p10, %p1110_p1  ;;  %s713_s28 = scalar_lea.vmem %s140_s22, 64 }
  0x14   : > { %p714_p3 = scmp.ne.s32.totalorder %s140_s22, %s713_s28  ;;  %p721_p9 = scmp.lt.s32.totalorder %s140_s22, %s140_s22 }
  0x15   : > { %p704_p0 = pneg %p937_p11  ;;  %p722_p2 = scmp.lt.s32.totalorder %s713_s28, %s713_s28 }
  0x17   : > { %p716_p5 = pnand %p714_p3, %p704_p0  ;;  %p723_p10 = por %p722_p2, %p721_p9 }
  0x19   : > { %p717_p7 = pneg %p716_p5 }
  0x1b   : > { %p724_p1 = pnand %p723_p10, %p717_p7 }
  0x1d   : > { %727 = shalt.err (!%p724_p1)
}
  0x1e   : > { %646 = dma.hbm_to_vmem [thread:$0]  (!%p937_p11), %s1108_s2, 64, %s140_s22, [#allocation6]  }
  0x1f   : > { %s960_s4 = scalar_select %p943_p12, %s852_s14, %s29_s27  }
  0x20   : > { %p37_p1 = scmp.eq.s32.totalorder %s856_s15, 0  ;;  %p1119_p2 = scmp.eq.s32.totalorder %s906_s16, 1 }
  0x21   : > { %p659_p0 = scmp.lt.s32.totalorder %s856_s15, 2  ;;  %s150_s6 = sand.u32 1, %s852_s14  }
  0x22   : > { %p968_p9 = por %p1119_p2, %p36_p13  ;;  %p38_p3 = por %p37_p1, %p36_p13 }
  0x23   : > { %s977_s7 = sshll.u32 %s150_s6, 3  ;;  %s599_s8 = sshll.u32 %s856_s15, 7 }
  0x24   : > { %s1120_s5 = scalar_select %p968_p9, 1, 0 }
  0x25   : > { %s983_s11 = scalar_lea.hbm %s1106_s0, %s599_s8  ;;  %s154_s17 = scalar_lea.vmem [#allocation2], %s977_s7 }
  0x26   : > { %s161_s21 = sshll.u32 %s154_s17, 4  ;;  %p986_p11 = pnand %p659_p0, %p38_p3  ;;  %s162_s21 = int_to_ptr.vmem [resolvable:$true] %s161_s21 }
  0x27   : > { %s993_s26 = scalar_lea.hbm %s1107_s1, %s599_s8  ;;  %s151_s27 = scalar_lea.sflag [#allocation3], %s150_s6 }
  0x28   : > { %s728_s28 = scalar_lea.hbm %s983_s11, 128  ;;  %p730_p13 = pneg %p986_p11 }
  0x29   : > { %p729_p12 = scmp.ne.s32.totalorder %s983_s11, %s728_s28  ;;  %s733_s9 = scalar_lea.hbm %s1106_s0, 256 }
  0x2a   : > { %p734_p10 = scmp.lt.s32.totalorder %s983_s11, %s1106_s0  ;;  %p735_p1 = scmp.lt.s32.totalorder %s733_s9, %s728_s28 }
  0x2b   : > { %p731_p5 = pnand %p730_p13, %p729_p12 }
  0x2c   : > { %p736_p2 = por %p735_p1, %p734_p10 }
  0x2d   : > { %p732_p7 = pneg %p731_p5 }
  0x2f   : > { %p737_p0 = pnand %p736_p2, %p732_p7 }
  0x31   : > { %740 = shalt.err (!%p737_p0)
}
  0x32   : > { %s741_s6 = scalar_lea.vmem %s162_s21, 128  ;;  %s859_s8 = smov [#allocation2]  }
  0x33   : > { %p742_p3 = scmp.ne.s32.totalorder %s162_s21, %s741_s6  ;;  %s746_s24 = sshll.u32 %s859_s8, 4  ;;  %s747_s24 = int_to_ptr.vmem [resolvable:$false] %s746_s24 }
  0x34   : > { %s748_s25 = scalar_lea.vmem %s747_s24, 256  ;;  %p749_p5 = scmp.lt.s32.totalorder %s162_s21, %s747_s24 }
  0x35   : > { %p744_p6 = pnand %p742_p3, %p730_p13  ;;  %p750_p9 = scmp.lt.s32.totalorder %s748_s25, %s741_s6 }
  0x37   : > { %p745_p12 = pneg %p744_p6  ;;  %p751_p4 = por %p750_p9, %p749_p5 }
  0x39   : > { %p752_p8 = pnand %p751_p4, %p745_p12 }
  0x3b   : > { %755 = shalt.err (!%p752_p8)
}
  0x3c   : > { %650 = dma.hbm_to_vmem [thread:$0]  (!%p986_p11), %s983_s11, 128, %s162_s21, %s151_s27  }
  0x3d   : > { %s168_s28 = sand.u32 1, %s856_s15   ;;  %s172_s29 = scalar_lea.vmem [#allocation5], %s977_s7 }
  0x3e   : > { %s179_s30 = sshll.u32 %s172_s29, 4  ;;  %s169_s9 = scalar_lea.sflag [#allocation6], %s168_s28  ;;  %s180_s30 = int_to_ptr.vmem [resolvable:$true] %s179_s30 }
  0x3f   : > { %s756_s10 = scalar_lea.hbm %s993_s26, 128  ;;  %s761_s8 = scalar_lea.hbm %s1107_s1, 256 }
  0x40   : > { %p757_p6 = scmp.ne.s32.totalorder %s993_s26, %s756_s10  ;;  %p762_p9 = scmp.lt.s32.totalorder %s993_s26, %s1107_s1 }
  0x41   : > { %p763_p7 = scmp.lt.s32.totalorder %s761_s8, %s756_s10 }
  0x42   : > { %p759_p4 = pnand %p757_p6, %p730_p13 }
  0x43   : > { %p764_p10 = por %p763_p7, %p762_p9 }
  0x44   : > { %p760_p8 = pneg %p759_p4 }
  0x46   : > { %p765_p1 = pnand %p764_p10, %p760_p8 }
  0x48   : > { %768 = shalt.err (!%p765_p1)
}
  0x49   : > { %s769_s7 = scalar_lea.vmem %s180_s30, 128  ;;  %s860_s11 = smov [#allocation5]  }
  0x4a   : > { %p770_p2 = scmp.ne.s32.totalorder %s180_s30, %s769_s7  ;;  %s774_s21 = sshll.u32 %s860_s11, 4  ;;  %s775_s21 = int_to_ptr.vmem [resolvable:$false] %s774_s21 }
  0x4b   : > { %s776_s27 = scalar_lea.vmem %s775_s21, 256  ;;  %p777_p12 = scmp.lt.s32.totalorder %s180_s30, %s775_s21 }
  0x4c   : > { %p772_p0 = pnand %p770_p2, %p730_p13  ;;  %p778_p5 = scmp.lt.s32.totalorder %s776_s27, %s769_s7 }
  0x4e   : > { %p773_p3 = pneg %p772_p0  ;;  %p779_p6 = por %p778_p5, %p777_p12 }
  0x50   : > { %p780_p4 = pnand %p779_p6, %p773_p3 }
  0x52   : > { %783 = shalt.err (!%p780_p4)
}
  0x53   : > { %653 = dma.hbm_to_vmem [thread:$0]  (!%p986_p11), %s993_s26, 128, %s180_s30, %s169_s9  }
  0x54   : > { %p1122_p8 = scmp.ne.s32.totalorder %s1116_s20, 0 }
  0x55   : > { %s1038_s28 = sand.u32 (!%p1122_p8), 1, %s848_s13   ;;  %p1123_p13 = scmp.ne.s32.totalorder (!%p1122_p8), %s1114_s18, 0 }
  0x56   : > { %188 = sbr.rel (%p1122_p8) target bundleno = 681 (0x2a9), region = 32  ;;  %s1041_s29 = sshll.u32 (!%p1122_p8), %s1038_s28, 3 }
  0x57   : > { %s191_s10 = scalar_lea.sflag (!%p1122_p8), [#allocation3], %s1038_s28  ;;  %s194_s17 = scalar_lea.vmem (!%p1122_p8), [#allocation2], %s1041_s29 }
  0x5b   : > { %827 = dma.done.wait (%p1123_p13), %s191_s10, 128  }
  0x5c   : > { %829 = vsyncadd (%p1123_p13), %s191_s10, 4294967168  ;;  %s199_s20 = sand.u32 1, %s906_s16   ;;  %s203_s26 = scalar_lea.vmem [#allocation5], %s1041_s29 }
  0x5d   : > { %s200_s22 = scalar_lea.sflag [#allocation6], %s199_s20 }
  0x5e   : > { %831 = dma.done.wait (%p1123_p13), %s200_s22, 128  }
  0x5f   : > { %833 = vsyncadd (%p1123_p13), %s200_s22, 4294967168  ;;  %p1124_p11 = scmp.eq.s32.totalorder %s906_s16, 0 }
  0x61   : > { %835 = dma.done.wait (%p1124_p11), [#allocation6], 64   ;;  %p1125_p9 = pmov %p1124_p11 }
  0x62   : > { %v250_v0 = vlaneseq  ;;  %v861_v1 = vmov 1966171168   ;;  %v235_v7 = vld [vmem:[%s194_s17] sm:$0xff]  ;;  %v236_v23 = vld [vmem:[%s203_s26] sm:$0xff]  ;;  %vm392_vm8 = vcmask 64512   ;;  %v862_v40 = vmov 0.0  }
  0x63   : > { %837 = vsyncadd (%p1125_p9), [#allocation6], 4294967232  ;;  %v248_v2 = vunpack.c.l.s4 %v861_v1  ;;  %v607_v8 = vld.sshfl [vmem:[#allocation7] sm:$0x33 pattern:$0x75316420]  ;;  %620 = vmatprep.subr.mxu0 %v235_v7  ;;  %628 = vmatprep.subr.mxu1 %v862_v40 }
  0x64   : > { %v251_v3 = vshrl.u32 %v250_v0, 7  ;;  %v246_v9 = vcombine.high %v607_v8, %v607_v8  ;;  %621 = vmatpush3.xpose.msra.mxu0 %v235_v7  ;;  %vm384_vm1 = vcmp.eq.s32.totalorder %v236_v23, 1  ;;  %vm386_vm3 = vcmp.eq.s32.totalorder %v236_v23, 2  ;;  %629 = vmatpush3.msra.mxu1 %v235_v7  ;;  %s610_s18 = sshll.u32 %s906_s16, 7  ;;  %s234_s30 = scalar_lea.vmem [#allocation8], %s1041_s29 }
  0x65   : > { %v249_v4 = vunpack.c.0.s8 %v248_v2  ;;  %vm388_vm6 = vcmp.eq.s32.totalorder %v236_v23, 3  ;;  %vm390_vm7 = vcmp.eq.s32.totalorder %v236_v23, 4  ;;  %vm863_vm9 = vmmov 0   ;;  %s492_s9 = sshll.u32 %s234_s30, 4  ;;  %s1069_s24 = scalar_lea.hbm %s1109_s3, %s610_s18  ;;  %s493_s9 = int_to_ptr.vmem [resolvable:$true] %s492_s9 }
  0x66   : > { %v265_v6 = vsub.s32 0, %v251_v3  ;;  %630 = vmatprep.mubr.msk.f32.mxu1 %vm863_vm9, %v862_v40  ;;  %s479_s25 = scalar_lea.sflag [#allocation4], %s1038_s28  ;;  %s784_s7 = scalar_lea.vmem %s493_s9, 128 }
  0x67   : > { %v252_v5 = vsub.s32 %v249_v4, %v251_v3  ;;  %p785_p7 = scmp.ne.s32.totalorder %s493_s9, %s784_s7  ;;  %p1126_p10 = scmp.ne.s32.totalorder %s1120_s5, 0 }
  0x68   : > { %s864_s16 = smov [#allocation8]  }
  0x69   : > { %v253_v10 = vrot.slane %v607_v8, %v252_v5  ;;  %v260_v13 = vrot.slane %v246_v9, %v252_v5  ;;  %p786_p1 = pnand %p785_p7, %p1126_p10  ;;  %s788_s11 = sshll.u32 %s864_s16, 4  ;;  %s789_s11 = int_to_ptr.vmem [resolvable:$false] %s788_s11 }
  0x6a   : > { %s790_s21 = scalar_lea.vmem %s789_s11, 256  ;;  %p791_p0 = scmp.lt.s32.totalorder %s493_s9, %s789_s11 }
  0x6b   : > { %v261_v11 = vcombine.high %v253_v10, %v253_v10  ;;  %v266_v12 = vrot.slane %v253_v10, %v265_v6  ;;  %v270_v15 = vrot.slane %v260_v13, %v265_v6  ;;  %v262_v17 = vcombine.high %v260_v13, %v260_v13  ;;  %p787_p2 = pneg %p786_p1  ;;  %p792_p3 = scmp.lt.s32.totalorder %s790_s21, %s784_s7 }
  0x6d   : > { %v283_v14 = vmul.f32 %v266_v12, %v235_v7  ;;  %v274_v16 = vrot.slane %v261_v11, %v265_v6  ;;  %v284_v18 = vmul.f32 %v270_v15, %v235_v7  ;;  %v278_v20 = vrot.slane %v262_v17, %v265_v6  ;;  %p793_p12 = por %p792_p3, %p791_p0 }
  0x6f   : > { %622 = vmatprep.mubr.f32.mxu0 %v283_v14  ;;  %v285_v19 = vmul.f32 %v274_v16, %v235_v7  ;;  %v286_v21 = vmul.f32 %v278_v20, %v235_v7  ;;  %p794_p5 = pnand %p793_p12, %p787_p2 }
  0x70   : > { %623 = vmatmul.mubr.f32.vlgmr.msra.gmra.mxu0 %v284_v18 }
  0x71   : > { %625 = vmatprep.mubr.f32.mxu0 %v285_v19 }
  0x74   : > { %626 = vmatmul.mubr.f32.gmra.mxu0 %v286_v21 }
 0x130   : > { %v624_v22 = vpop.f32.mrf.mxu0 }
 0x131   : > { %v377_v26 = vmul.f32 0.2, %v624_v22  ;;  %vm373_vm2 = vcmp.gt.f32.partialorder %v624_v22, 0.0 }
 0x132   : > { %v353_v24 = vpop.f32.mrf.mxu0 }
 0x133   : > { %vm372_vm0 = vcmp.gt.f32.partialorder %v353_v24, 0.0  ;;  %v376_v25 = vmul.f32 0.2, %v353_v24  ;;  %v381_v33 = vsel %vm373_vm2, %v624_v22, %v377_v26 }
 0x134   : > { %v627_v27 = vpop.f32.mrf.mxu0 }
 0x135   : > { %v380_v28 = vsel %vm372_vm0, %v353_v24, %v376_v25  ;;  %v379_v30 = vmul.f32 0.2, %v627_v27  ;;  %vm375_vm4 = vcmp.gt.f32.partialorder %v627_v27, 0.0 }
 0x136   : > { %v385_v29 = vsel %vm384_vm1, %v380_v28, -9e+15  ;;  %v363_v31 = vpop.f32.mrf.mxu0 }
 0x137   : > { %vm374_vm5 = vcmp.gt.f32.partialorder %v363_v31, 0.0  ;;  %v378_v32 = vmul.f32 0.2, %v363_v31  ;;  %v387_v35 = vsel %vm386_vm3, %v381_v33, %v385_v29  ;;  %v383_v36 = vsel %vm375_vm4, %v627_v27, %v379_v30 }
 0x139   : > { %v382_v34 = vsel %vm374_vm5, %v363_v31, %v378_v32 }
 0x13a   : > { %v389_v37 = vsel %vm388_vm6, %v382_v34, %v387_v35 }
 0x13b   : > { %v391_v38 = vsel %vm390_vm7, %v383_v36, %v389_v37 }
 0x13c   : > { %v393_v39 = vsel %vm392_vm8, %v391_v38, -inf }
 0x13d   : > { %394 = vmax.xlane.f32.xlu0 %v393_v39 }
 0x1c6   : > { %v395_v41 = vpop.xlane.xlu0 %394 }
 0x1c7   : > { %v396_v42 = vsub.f32 %v391_v38, %v395_v41 }
 0x1c9   : > { %v397_v43 = vmul.f32 1.442695, %v396_v42 }
 0x1cb   : > { %698 = vpow2.f32 %v397_v43 }
 0x1d8   : > { %v699_v44 = vpop.eup %698 }
 0x1d9   : > { %631 = vmatmul.mubr.msk.f32.vlgmr.msra.gmra.mxu1 %vm392_vm8, %v699_v44  ;;  %v399_v45 = vsel %vm392_vm8, %v699_v44, 0.0 }
 0x1da   : > { %400 = vadd.xlane.f32.xlu0 %v399_v45 }
 0x263   : > { %v401_v46 = vpop.xlane.xlu0 %400 }
 0x264   : > { %700 = vrcp.f32 %v401_v46 }
 0x271   : > { %v701_v47 = vpop.eup %700 }
 0x299   : > { %v472_v48 = vpop.f32.mrf.mxu1 }
 0x29a   : > { %v476_v49 = vmul.f32 %v701_v47, %v472_v48 }
 0x29b   : > { %v632_v50 = vpop.f32.mrf.mxu1 }
 0x29c   : > { %477 = vst [vmem:[%s234_s30] sm:$0xff] %v476_v49 }
 0x29d   : > { %797 = shalt.err (!%p794_p5)
}
 0x29e   : > { %s798_s27 = scalar_lea.hbm %s1069_s24, 128  ;;  %s802_s10 = scalar_lea.hbm %s1109_s3, 256 }
 0x29f   : > { %p799_p6 = scmp.ne.s32.totalorder %s1069_s24, %s798_s27  ;;  %p803_p13 = scmp.lt.s32.totalorder %s1069_s24, %s1109_s3 }
 0x2a0   : > { %p804_p11 = scmp.lt.s32.totalorder %s802_s10, %s798_s27 }
 0x2a1   : > { %p800_p4 = pnand %p799_p6, %p1126_p10 }
 0x2a2   : > { %p805_p9 = por %p804_p11, %p803_p13 }
 0x2a3   : > { %p801_p8 = pneg %p800_p4 }
 0x2a5   : > { %p806_p7 = pnand %p805_p9, %p801_p8 }
 0x2a7   : > { %809 = shalt.err (!%p806_p7)
}
 0x2a8   : > { %641 = dma.vmem_to_hbm [thread:$0]  (%p1126_p10), %s493_s9, 128, %s1069_s24, %s479_s25  }
 0x2a9 PF: > { %s504_s22 = sand.u32 1, %s844_s12   ;;  %p1127_p1 = scmp.ne.s32.totalorder %s1115_s19, 0 }
 0x2aa   : > { %p1128_p2 = scmp.ge.s32.totalorder %s856_s15, 2  ;;  %s505_s26 = scalar_lea.sflag [#allocation4], %s504_s22 }
 0x2ac   : > { %p655_p0 = pnand %p1128_p2, %p1127_p1 }
 0x2ae   : > { %p656_p3 = pneg %p655_p0 }
 0x2b0   : > { %839 = dma.done.wait (%p656_p3), %s505_s26, 128  }
 0x2b1   : > { %841 = vsyncadd (%p656_p3), %s505_s26, 4294967168  ;;  %p19_p12 = scmp.ge.s32.totalorder %s933_s23, 4   ;;  %s1129_s12 = smov %s848_s13 }
 0x2b2   : > { %s1130_s13 = smov %s852_s14  ;;  %s1131_s14 = smov %s960_s4 }
 0x2b3   : > { %s1132_s15 = smov %s933_s23  ;;  %21 = sbr.rel (!%p19_p12) target bundleno = 7 (0x7), region = 94 }
 0x2b8   :  { %510 = vsyncpa [#allocation3], 1 }
 0x2b9   :  { %512 = vsyncpa [#allocation3 + $0x1], 1 }
 0x2ba   :  { %513 = vsyncpa [#allocation6], 1 }
 0x2bb   :  { %515 = vsyncpa [#allocation6 + $0x1], 1 }
 0x2bc   :  { %516 = vsyncpa [#allocation4], 1 }
 0x2bd   :  { %518 = vsyncpa [#allocation4 + $0x1], 1 }

</bundles_post_ra>
